<compile_context>
chip_gen: v7x
topology: tpu7x:2x2x1
jax: 0.10.0
libtpu: 0.0.40
codegen_flags: <defaults>
</compile_context>

<pallas_src>
import functools

import jax
import jax.numpy as jnp
from jax.experimental import pallas as pl
from jax.experimental.pallas import tpu as pltpu


def _fused_lstm_kernel(x2d_ref, w_ih_ref, w_hh_ref, b_ref, out_ref, *,
                       seq, batch, n_labels):
    H = n_labels

    # Input projection for ALL timesteps in one MXU matmul, bias folded in.
    # gates_x rows are ordered [t0b0, t0b1, ..., t1b0, ...].
    gates_x = (jnp.dot(x2d_ref[...], w_ih_ref[...],
                       preferred_element_type=jnp.float32)
               + b_ref[...])                                # (seq*batch, 4H)

    w_hh = w_hh_ref[...]                                    # (H, 4H), (i,f,o,g)

    h = jnp.zeros((batch, H), jnp.float32)
    c = jnp.zeros((batch, H), jnp.float32)

    # Serial recurrence, fully unrolled (seq is small & static) -> straight-line
    # code with only static slices; one tiny MXU matmul per step.
    for t in range(seq):
        g = gates_x[t * batch:(t + 1) * batch, :] + jnp.dot(
            h, w_hh, preferred_element_type=jnp.float32)    # (batch, 4H)
        sig = jax.nn.sigmoid(g[:, :3 * H])                  # contiguous sigmoid
        i_g = sig[:, 0 * H:1 * H]
        f_g = sig[:, 1 * H:2 * H]
        o_g = sig[:, 2 * H:3 * H]
        g_g = jnp.tanh(g[:, 3 * H:4 * H])                   # contiguous tanh
        c = f_g * c + i_g * g_g
        h = o_g * jnp.tanh(c)
        # Static lane-slice store into the VMEM-resident output block; the HBM
        # writeback of the whole (batch, seq*H) slab happens once at the end.
        out_ref[:, t * H:(t + 1) * H] = h.astype(out_ref.dtype)


def lm_lstm_decoder_forward(x, w_ih, w_hh, b_ih, b_hh, *, n_labels):
    """x: (seq, batch, hidden_size) float32.

    Returns: (batch, seq, n_labels) float32, matching
    LMLSTMDecoder.forward(x) == lstm(x)[0].transpose(0, 1).
    """
    seq, batch, hidden = x.shape
    H = n_labels

    # Wrapper-side weight prep (zero runtime cost inside the kernel):
    #  - permute gate blocks from PyTorch (i,f,g,o) to (i,f,o,g)
    #  - transpose so the kernel does plain (B,K)@(K,4H) matmuls
    def permute_and_t(w):                     # w: (4H, K) PyTorch row layout
        i_b, f_b, g_b, o_b = jnp.split(w, 4, axis=0)
        return jnp.transpose(jnp.concatenate([i_b, f_b, o_b, g_b], axis=0))

    w_ih_t = permute_and_t(w_ih)              # (hidden, 4H)
    w_hh_t = permute_and_t(w_hh)              # (H, 4H)
    b_sum = b_ih + b_hh
    bi, bf, bg, bo = jnp.split(b_sum, 4)
    bias = jnp.concatenate([bi, bf, bo, bg]).reshape(1, 4 * H)   # (1, 4H)

    # Contiguous (free) reshape: row r = t*batch + b  ->  x[t, b, :].
    x2d = x.reshape(seq * batch, hidden)

    kernel = functools.partial(_fused_lstm_kernel, seq=seq, batch=batch,
                               n_labels=H)

    vmem = pltpu.MemorySpace.VMEM
    out2d = pl.pallas_call(
        kernel,
        out_shape=jax.ShapeDtypeStruct((batch, seq * H), x.dtype),
        in_specs=[
            pl.BlockSpec(memory_space=vmem),  # x2d
            pl.BlockSpec(memory_space=vmem),  # w_ih_t
            pl.BlockSpec(memory_space=vmem),  # w_hh_t
            pl.BlockSpec(memory_space=vmem),  # bias
        ],
        out_specs=pl.BlockSpec(memory_space=vmem),
    )(x2d, w_ih_t, w_hh_t, bias)

    # Metadata-only reshape (contiguous): out2d[b, t*H + j] == h_t[b, j].
    return out2d.reshape(batch, seq, H)


def _reference_lstm(x, w_ih, w_hh, b_ih, b_hh, n_labels):
    """Pure-JAX reference matching torch.nn.LSTM forward (zero init state)."""
    H = n_labels
    b = b_ih + b_hh

    def step(carry, x_t):
        h, c = carry
        gates = x_t @ w_ih.T + h @ w_hh.T + b
        i_g = jax.nn.sigmoid(gates[:, 0 * H:1 * H])
        f_g = jax.nn.sigmoid(gates[:, 1 * H:2 * H])
        g_g = jnp.tanh(gates[:, 2 * H:3 * H])
        o_g = jax.nn.sigmoid(gates[:, 3 * H:4 * H])
        c_new = f_g * c + i_g * g_g
        h_new = o_g * jnp.tanh(c_new)
        return (h_new, c_new), h_new

    batch = x.shape[1]
    h0 = jnp.zeros((batch, H), jnp.float32)
    c0 = jnp.zeros((batch, H), jnp.float32)
    _, out = jax.lax.scan(step, (h0, c0), x)
    return jnp.transpose(out, (1, 0, 2))


if __name__ == "__main__":
    hidden_size = 32
    n_labels = 16
    seq_len = 8
    batch = 2

    key = jax.random.PRNGKey(0)
    k_x, k_wih, k_whh, k_bih, k_bhh = jax.random.split(key, 5)

    def xavier(k, shape):
        fan_out, fan_in = shape
        limit = (6.0 / (fan_in + fan_out)) ** 0.5
        return jax.random.uniform(k, shape, jnp.float32, -limit, limit)

    w_ih = xavier(k_wih, (4 * n_labels, hidden_size))
    w_hh = xavier(k_whh, (4 * n_labels, n_labels))
    b_ih = jax.random.uniform(k_bih, (4 * n_labels,), jnp.float32, -0.1, 0.1)
    b_hh = jax.random.uniform(k_bhh, (4 * n_labels,), jnp.float32, -0.1, 0.1)

    # Input: (seq, batch, hidden_size) — PyTorch LSTM default layout.
    x = jax.random.normal(k_x, (seq_len, batch, hidden_size), jnp.float32)

    out = lm_lstm_decoder_forward(x, w_ih, w_hh, b_ih, b_hh, n_labels=n_labels)
    out = jax.block_until_ready(out)

    assert out.shape == (batch, seq_len, n_labels), out.shape

    ref = _reference_lstm(x, w_ih, w_hh, b_ih, b_hh, n_labels)
    ref = jax.block_until_ready(ref)
    assert jnp.allclose(out, ref, atol=1e-5, rtol=1e-5), (
        float(jnp.max(jnp.abs(out - ref))))

    print("KERNEL_OK")
</pallas_src>

<mosaic_0001>
module attributes {stable_mosaic.version = 11 : i64} {
  func.func @_fused_lstm_kernel(%arg0: memref<16x32xf32, #tpu.memory_space<vmem>>, %arg1: memref<32x64xf32, #tpu.memory_space<vmem>>, %arg2: memref<16x64xf32, #tpu.memory_space<vmem>>, %arg3: memref<1x64xf32, #tpu.memory_space<vmem>>, %arg4: memref<2x128xf32, #tpu.memory_space<vmem>>) attributes {dimension_semantics = [], scalar_prefetch = 0 : i64, scratch_operands = 0 : i64, tpu.core_type = #tpu.core_type<tc>} {
    %c0 = arith.constant 0 : index
    %c0_0 = arith.constant 0 : index
    %0 = vector.load %arg0[%c0, %c0_0] : memref<16x32xf32, #tpu.memory_space<vmem>>, vector<16x32xf32>
    %c0_1 = arith.constant 0 : index
    %c0_2 = arith.constant 0 : index
    %1 = vector.load %arg1[%c0_1, %c0_2] : memref<32x64xf32, #tpu.memory_space<vmem>>, vector<32x64xf32>
    %cst = arith.constant dense<0.000000e+00> : vector<16x64xf32>
    %2 = tpu.matmul %0, %1, %cst {dimension_numbers = #tpu.dot_dimension_numbers<[1], [0], [0], [1], [0, 0, 1, 1], [], []>} : vector<16x32xf32>, vector<32x64xf32>, vector<16x64xf32> -> vector<16x64xf32>
    %c0_3 = arith.constant 0 : index
    %c0_4 = arith.constant 0 : index
    %3 = vector.load %arg3[%c0_3, %c0_4] : memref<1x64xf32, #tpu.memory_space<vmem>>, vector<1x64xf32>
    %4 = vector.broadcast %3 : vector<1x64xf32> to vector<16x64xf32>
    %5 = arith.addf %2, %4 : vector<16x64xf32>
    %c0_5 = arith.constant 0 : index
    %c0_6 = arith.constant 0 : index
    %6 = vector.load %arg2[%c0_5, %c0_6] : memref<16x64xf32, #tpu.memory_space<vmem>>, vector<16x64xf32>
    %cst_7 = arith.constant 0.000000e+00 : f32
    %7 = vector.broadcast %cst_7 : f32 to vector<2x16xf32>
    %cst_8 = arith.constant 0.000000e+00 : f32
    %8 = vector.broadcast %cst_8 : f32 to vector<2x16xf32>
    %9 = vector.extract_strided_slice %5 {offsets = [0, 0], sizes = [2, 64], strides = [1, 1]} : vector<16x64xf32> to vector<2x64xf32>
    %cst_9 = arith.constant dense<0.000000e+00> : vector<2x64xf32>
    %10 = tpu.matmul %7, %6, %cst_9 {dimension_numbers = #tpu.dot_dimension_numbers<[1], [0], [0], [1], [0, 0, 1, 1], [], []>} : vector<2x16xf32>, vector<16x64xf32>, vector<2x64xf32> -> vector<2x64xf32>
    %11 = arith.addf %9, %10 : vector<2x64xf32>
    %12 = vector.extract_strided_slice %11 {offsets = [0, 0], sizes = [2, 48], strides = [1, 1]} : vector<2x64xf32> to vector<2x48xf32>
    %13 = arith.negf %12 : vector<2x48xf32>
    %14 = math.exp %13 : vector<2x48xf32>
    %cst_10 = arith.constant 1.000000e+00 : f32
    %15 = vector.broadcast %cst_10 : f32 to vector<2x48xf32>
    %16 = arith.addf %15, %14 : vector<2x48xf32>
    %17 = arith.divf %15, %16 : vector<2x48xf32>
    %18 = vector.extract_strided_slice %17 {offsets = [0, 0], sizes = [2, 16], strides = [1, 1]} : vector<2x48xf32> to vector<2x16xf32>
    %19 = vector.extract_strided_slice %17 {offsets = [0, 16], sizes = [2, 16], strides = [1, 1]} : vector<2x48xf32> to vector<2x16xf32>
    %20 = vector.extract_strided_slice %17 {offsets = [0, 32], sizes = [2, 16], strides = [1, 1]} : vector<2x48xf32> to vector<2x16xf32>
    %21 = vector.extract_strided_slice %11 {offsets = [0, 48], sizes = [2, 16], strides = [1, 1]} : vector<2x64xf32> to vector<2x16xf32>
    %22 = math.tanh %21 : vector<2x16xf32>
    %23 = arith.mulf %19, %8 : vector<2x16xf32>
    %24 = arith.mulf %18, %22 : vector<2x16xf32>
    %25 = arith.addf %23, %24 : vector<2x16xf32>
    %26 = math.tanh %25 : vector<2x16xf32>
    %27 = arith.mulf %20, %26 : vector<2x16xf32>
    %c0_11 = arith.constant 0 : index
    %c0_12 = arith.constant 0 : index
    %28 = vector.load %arg4[%c0_11, %c0_12] : memref<2x128xf32, #tpu.memory_space<vmem>>, vector<2x16xf32>
    tpu.vector_store %arg4[%c0_11, %c0_12], %27 {strides = array<i32>} : memref<2x128xf32, #tpu.memory_space<vmem>>, vector<2x16xf32>,
    %29 = vector.extract_strided_slice %5 {offsets = [2, 0], sizes = [2, 64], strides = [1, 1]} : vector<16x64xf32> to vector<2x64xf32>
    %cst_13 = arith.constant dense<0.000000e+00> : vector<2x64xf32>
    %30 = tpu.matmul %27, %6, %cst_13 {dimension_numbers = #tpu.dot_dimension_numbers<[1], [0], [0], [1], [0, 0, 1, 1], [], []>} : vector<2x16xf32>, vector<16x64xf32>, vector<2x64xf32> -> vector<2x64xf32>
    %31 = arith.addf %29, %30 : vector<2x64xf32>
    %32 = vector.extract_strided_slice %31 {offsets = [0, 0], sizes = [2, 48], strides = [1, 1]} : vector<2x64xf32> to vector<2x48xf32>
    %33 = arith.negf %32 : vector<2x48xf32>
    %34 = math.exp %33 : vector<2x48xf32>
    %cst_14 = arith.constant 1.000000e+00 : f32
    %35 = vector.broadcast %cst_14 : f32 to vector<2x48xf32>
    %36 = arith.addf %35, %34 : vector<2x48xf32>
    %37 = arith.divf %35, %36 : vector<2x48xf32>
    %38 = vector.extract_strided_slice %37 {offsets = [0, 0], sizes = [2, 16], strides = [1, 1]} : vector<2x48xf32> to vector<2x16xf32>
    %39 = vector.extract_strided_slice %37 {offsets = [0, 16], sizes = [2, 16], strides = [1, 1]} : vector<2x48xf32> to vector<2x16xf32>
    %40 = vector.extract_strided_slice %37 {offsets = [0, 32], sizes = [2, 16], strides = [1, 1]} : vector<2x48xf32> to vector<2x16xf32>
    %41 = vector.extract_strided_slice %31 {offsets = [0, 48], sizes = [2, 16], strides = [1, 1]} : vector<2x64xf32> to vector<2x16xf32>
    %42 = math.tanh %41 : vector<2x16xf32>
    %43 = arith.mulf %39, %25 : vector<2x16xf32>
    %44 = arith.mulf %38, %42 : vector<2x16xf32>
    %45 = arith.addf %43, %44 : vector<2x16xf32>
    %46 = math.tanh %45 : vector<2x16xf32>
    %47 = arith.mulf %40, %46 : vector<2x16xf32>
    %c0_15 = arith.constant 0 : index
    %c16 = arith.constant 16 : index
    %48 = vector.load %arg4[%c0_15, %c16] : memref<2x128xf32, #tpu.memory_space<vmem>>, vector<2x16xf32>
    tpu.vector_store %arg4[%c0_15, %c16], %47 {strides = array<i32>} : memref<2x128xf32, #tpu.memory_space<vmem>>, vector<2x16xf32>,
    %49 = vector.extract_strided_slice %5 {offsets = [4, 0], sizes = [2, 64], strides = [1, 1]} : vector<16x64xf32> to vector<2x64xf32>
    %cst_16 = arith.constant dense<0.000000e+00> : vector<2x64xf32>
    %50 = tpu.matmul %47, %6, %cst_16 {dimension_numbers = #tpu.dot_dimension_numbers<[1], [0], [0], [1], [0, 0, 1, 1], [], []>} : vector<2x16xf32>, vector<16x64xf32>, vector<2x64xf32> -> vector<2x64xf32>
    %51 = arith.addf %49, %50 : vector<2x64xf32>
    %52 = vector.extract_strided_slice %51 {offsets = [0, 0], sizes = [2, 48], strides = [1, 1]} : vector<2x64xf32> to vector<2x48xf32>
    %53 = arith.negf %52 : vector<2x48xf32>
    %54 = math.exp %53 : vector<2x48xf32>
    %cst_17 = arith.constant 1.000000e+00 : f32
    %55 = vector.broadcast %cst_17 : f32 to vector<2x48xf32>
    %56 = arith.addf %55, %54 : vector<2x48xf32>
    %57 = arith.divf %55, %56 : vector<2x48xf32>
    %58 = vector.extract_strided_slice %57 {offsets = [0, 0], sizes = [2, 16], strides = [1, 1]} : vector<2x48xf32> to vector<2x16xf32>
    %59 = vector.extract_strided_slice %57 {offsets = [0, 16], sizes = [2, 16], strides = [1, 1]} : vector<2x48xf32> to vector<2x16xf32>
    %60 = vector.extract_strided_slice %57 {offsets = [0, 32], sizes = [2, 16], strides = [1, 1]} : vector<2x48xf32> to vector<2x16xf32>
    %61 = vector.extract_strided_slice %51 {offsets = [0, 48], sizes = [2, 16], strides = [1, 1]} : vector<2x64xf32> to vector<2x16xf32>
    %62 = math.tanh %61 : vector<2x16xf32>
    %63 = arith.mulf %59, %45 : vector<2x16xf32>
    %64 = arith.mulf %58, %62 : vector<2x16xf32>
    %65 = arith.addf %63, %64 : vector<2x16xf32>
    %66 = math.tanh %65 : vector<2x16xf32>
    %67 = arith.mulf %60, %66 : vector<2x16xf32>
    %c0_18 = arith.constant 0 : index
    %c32 = arith.constant 32 : index
    %68 = vector.load %arg4[%c0_18, %c32] : memref<2x128xf32, #tpu.memory_space<vmem>>, vector<2x16xf32>
    tpu.vector_store %arg4[%c0_18, %c32], %67 {strides = array<i32>} : memref<2x128xf32, #tpu.memory_space<vmem>>, vector<2x16xf32>,
    %69 = vector.extract_strided_slice %5 {offsets = [6, 0], sizes = [2, 64], strides = [1, 1]} : vector<16x64xf32> to vector<2x64xf32>
    %cst_19 = arith.constant dense<0.000000e+00> : vector<2x64xf32>
    %70 = tpu.matmul %67, %6, %cst_19 {dimension_numbers = #tpu.dot_dimension_numbers<[1], [0], [0], [1], [0, 0, 1, 1], [], []>} : vector<2x16xf32>, vector<16x64xf32>, vector<2x64xf32> -> vector<2x64xf32>
    %71 = arith.addf %69, %70 : vector<2x64xf32>
    %72 = vector.extract_strided_slice %71 {offsets = [0, 0], sizes = [2, 48], strides = [1, 1]} : vector<2x64xf32> to vector<2x48xf32>
    %73 = arith.negf %72 : vector<2x48xf32>
    %74 = math.exp %73 : vector<2x48xf32>
    %cst_20 = arith.constant 1.000000e+00 : f32
    %75 = vector.broadcast %cst_20 : f32 to vector<2x48xf32>
    %76 = arith.addf %75, %74 : vector<2x48xf32>
    %77 = arith.divf %75, %76 : vector<2x48xf32>
    %78 = vector.extract_strided_slice %77 {offsets = [0, 0], sizes = [2, 16], strides = [1, 1]} : vector<2x48xf32> to vector<2x16xf32>
    %79 = vector.extract_strided_slice %77 {offsets = [0, 16], sizes = [2, 16], strides = [1, 1]} : vector<2x48xf32> to vector<2x16xf32>
    %80 = vector.extract_strided_slice %77 {offsets = [0, 32], sizes = [2, 16], strides = [1, 1]} : vector<2x48xf32> to vector<2x16xf32>
    %81 = vector.extract_strided_slice %71 {offsets = [0, 48], sizes = [2, 16], strides = [1, 1]} : vector<2x64xf32> to vector<2x16xf32>
    %82 = math.tanh %81 : vector<2x16xf32>
    %83 = arith.mulf %79, %65 : vector<2x16xf32>
    %84 = arith.mulf %78, %82 : vector<2x16xf32>
    %85 = arith.addf %83, %84 : vector<2x16xf32>
    %86 = math.tanh %85 : vector<2x16xf32>
    %87 = arith.mulf %80, %86 : vector<2x16xf32>
    %c0_21 = arith.constant 0 : index
    %c48 = arith.constant 48 : index
    %88 = vector.load %arg4[%c0_21, %c48] : memref<2x128xf32, #tpu.memory_space<vmem>>, vector<2x16xf32>
    tpu.vector_store %arg4[%c0_21, %c48], %87 {strides = array<i32>} : memref<2x128xf32, #tpu.memory_space<vmem>>, vector<2x16xf32>,
    %89 = vector.extract_strided_slice %5 {offsets = [8, 0], sizes = [2, 64], strides = [1, 1]} : vector<16x64xf32> to vector<2x64xf32>
    %cst_22 = arith.constant dense<0.000000e+00> : vector<2x64xf32>
    %90 = tpu.matmul %87, %6, %cst_22 {dimension_numbers = #tpu.dot_dimension_numbers<[1], [0], [0], [1], [0, 0, 1, 1], [], []>} : vector<2x16xf32>, vector<16x64xf32>, vector<2x64xf32> -> vector<2x64xf32>
    %91 = arith.addf %89, %90 : vector<2x64xf32>
    %92 = vector.extract_strided_slice %91 {offsets = [0, 0], sizes = [2, 48], strides = [1, 1]} : vector<2x64xf32> to vector<2x48xf32>
    %93 = arith.negf %92 : vector<2x48xf32>
    %94 = math.exp %93 : vector<2x48xf32>
    %cst_23 = arith.constant 1.000000e+00 : f32
    %95 = vector.broadcast %cst_23 : f32 to vector<2x48xf32>
    %96 = arith.addf %95, %94 : vector<2x48xf32>
    %97 = arith.divf %95, %96 : vector<2x48xf32>
    %98 = vector.extract_strided_slice %97 {offsets = [0, 0], sizes = [2, 16], strides = [1, 1]} : vector<2x48xf32> to vector<2x16xf32>
    %99 = vector.extract_strided_slice %97 {offsets = [0, 16], sizes = [2, 16], strides = [1, 1]} : vector<2x48xf32> to vector<2x16xf32>
    %100 = vector.extract_strided_slice %97 {offsets = [0, 32], sizes = [2, 16], strides = [1, 1]} : vector<2x48xf32> to vector<2x16xf32>
    %101 = vector.extract_strided_slice %91 {offsets = [0, 48], sizes = [2, 16], strides = [1, 1]} : vector<2x64xf32> to vector<2x16xf32>
    %102 = math.tanh %101 : vector<2x16xf32>
    %103 = arith.mulf %99, %85 : vector<2x16xf32>
    %104 = arith.mulf %98, %102 : vector<2x16xf32>
    %105 = arith.addf %103, %104 : vector<2x16xf32>
    %106 = math.tanh %105 : vector<2x16xf32>
    %107 = arith.mulf %100, %106 : vector<2x16xf32>
    %c0_24 = arith.constant 0 : index
    %c64 = arith.constant 64 : index
    %108 = vector.load %arg4[%c0_24, %c64] : memref<2x128xf32, #tpu.memory_space<vmem>>, vector<2x16xf32>
    tpu.vector_store %arg4[%c0_24, %c64], %107 {strides = array<i32>} : memref<2x128xf32, #tpu.memory_space<vmem>>, vector<2x16xf32>,
    %109 = vector.extract_strided_slice %5 {offsets = [10, 0], sizes = [2, 64], strides = [1, 1]} : vector<16x64xf32> to vector<2x64xf32>
    %cst_25 = arith.constant dense<0.000000e+00> : vector<2x64xf32>
    %110 = tpu.matmul %107, %6, %cst_25 {dimension_numbers = #tpu.dot_dimension_numbers<[1], [0], [0], [1], [0, 0, 1, 1], [], []>} : vector<2x16xf32>, vector<16x64xf32>, vector<2x64xf32> -> vector<2x64xf32>
    %111 = arith.addf %109, %110 : vector<2x64xf32>
    %112 = vector.extract_strided_slice %111 {offsets = [0, 0], sizes = [2, 48], strides = [1, 1]} : vector<2x64xf32> to vector<2x48xf32>
    %113 = arith.negf %112 : vector<2x48xf32>
    %114 = math.exp %113 : vector<2x48xf32>
    %cst_26 = arith.constant 1.000000e+00 : f32
    %115 = vector.broadcast %cst_26 : f32 to vector<2x48xf32>
    %116 = arith.addf %115, %114 : vector<2x48xf32>
    %117 = arith.divf %115, %116 : vector<2x48xf32>
    %118 = vector.extract_strided_slice %117 {offsets = [0, 0], sizes = [2, 16], strides = [1, 1]} : vector<2x48xf32> to vector<2x16xf32>
    %119 = vector.extract_strided_slice %117 {offsets = [0, 16], sizes = [2, 16], strides = [1, 1]} : vector<2x48xf32> to vector<2x16xf32>
    %120 = vector.extract_strided_slice %117 {offsets = [0, 32], sizes = [2, 16], strides = [1, 1]} : vector<2x48xf32> to vector<2x16xf32>
    %121 = vector.extract_strided_slice %111 {offsets = [0, 48], sizes = [2, 16], strides = [1, 1]} : vector<2x64xf32> to vector<2x16xf32>
    %122 = math.tanh %121 : vector<2x16xf32>
    %123 = arith.mulf %119, %105 : vector<2x16xf32>
    %124 = arith.mulf %118, %122 : vector<2x16xf32>
    %125 = arith.addf %123, %124 : vector<2x16xf32>
    %126 = math.tanh %125 : vector<2x16xf32>
    %127 = arith.mulf %120, %126 : vector<2x16xf32>
    %c0_27 = arith.constant 0 : index
    %c80 = arith.constant 80 : index
    %128 = vector.load %arg4[%c0_27, %c80] : memref<2x128xf32, #tpu.memory_space<vmem>>, vector<2x16xf32>
    tpu.vector_store %arg4[%c0_27, %c80], %127 {strides = array<i32>} : memref<2x128xf32, #tpu.memory_space<vmem>>, vector<2x16xf32>,
    %129 = vector.extract_strided_slice %5 {offsets = [12, 0], sizes = [2, 64], strides = [1, 1]} : vector<16x64xf32> to vector<2x64xf32>
    %cst_28 = arith.constant dense<0.000000e+00> : vector<2x64xf32>
    %130 = tpu.matmul %127, %6, %cst_28 {dimension_numbers = #tpu.dot_dimension_numbers<[1], [0], [0], [1], [0, 0, 1, 1], [], []>} : vector<2x16xf32>, vector<16x64xf32>, vector<2x64xf32> -> vector<2x64xf32>
    %131 = arith.addf %129, %130 : vector<2x64xf32>
    %132 = vector.extract_strided_slice %131 {offsets = [0, 0], sizes = [2, 48], strides = [1, 1]} : vector<2x64xf32> to vector<2x48xf32>
    %133 = arith.negf %132 : vector<2x48xf32>
    %134 = math.exp %133 : vector<2x48xf32>
    %cst_29 = arith.constant 1.000000e+00 : f32
    %135 = vector.broadcast %cst_29 : f32 to vector<2x48xf32>
    %136 = arith.addf %135, %134 : vector<2x48xf32>
    %137 = arith.divf %135, %136 : vector<2x48xf32>
    %138 = vector.extract_strided_slice %137 {offsets = [0, 0], sizes = [2, 16], strides = [1, 1]} : vector<2x48xf32> to vector<2x16xf32>
    %139 = vector.extract_strided_slice %137 {offsets = [0, 16], sizes = [2, 16], strides = [1, 1]} : vector<2x48xf32> to vector<2x16xf32>
    %140 = vector.extract_strided_slice %137 {offsets = [0, 32], sizes = [2, 16], strides = [1, 1]} : vector<2x48xf32> to vector<2x16xf32>
    %141 = vector.extract_strided_slice %131 {offsets = [0, 48], sizes = [2, 16], strides = [1, 1]} : vector<2x64xf32> to vector<2x16xf32>
    %142 = math.tanh %141 : vector<2x16xf32>
    %143 = arith.mulf %139, %125 : vector<2x16xf32>
    %144 = arith.mulf %138, %142 : vector<2x16xf32>
    %145 = arith.addf %143, %144 : vector<2x16xf32>
    %146 = math.tanh %145 : vector<2x16xf32>
    %147 = arith.mulf %140, %146 : vector<2x16xf32>
    %c0_30 = arith.constant 0 : index
    %c96 = arith.constant 96 : index
    %148 = vector.load %arg4[%c0_30, %c96] : memref<2x128xf32, #tpu.memory_space<vmem>>, vector<2x16xf32>
    tpu.vector_store %arg4[%c0_30, %c96], %147 {strides = array<i32>} : memref<2x128xf32, #tpu.memory_space<vmem>>, vector<2x16xf32>,
    %149 = vector.extract_strided_slice %5 {offsets = [14, 0], sizes = [2, 64], strides = [1, 1]} : vector<16x64xf32> to vector<2x64xf32>
    %cst_31 = arith.constant dense<0.000000e+00> : vector<2x64xf32>
    %150 = tpu.matmul %147, %6, %cst_31 {dimension_numbers = #tpu.dot_dimension_numbers<[1], [0], [0], [1], [0, 0, 1, 1], [], []>} : vector<2x16xf32>, vector<16x64xf32>, vector<2x64xf32> -> vector<2x64xf32>
    %151 = arith.addf %149, %150 : vector<2x64xf32>
    %152 = vector.extract_strided_slice %151 {offsets = [0, 0], sizes = [2, 48], strides = [1, 1]} : vector<2x64xf32> to vector<2x48xf32>
    %153 = arith.negf %152 : vector<2x48xf32>
    %154 = math.exp %153 : vector<2x48xf32>
    %cst_32 = arith.constant 1.000000e+00 : f32
    %155 = vector.broadcast %cst_32 : f32 to vector<2x48xf32>
    %156 = arith.addf %155, %154 : vector<2x48xf32>
    %157 = arith.divf %155, %156 : vector<2x48xf32>
    %158 = vector.extract_strided_slice %157 {offsets = [0, 0], sizes = [2, 16], strides = [1, 1]} : vector<2x48xf32> to vector<2x16xf32>
    %159 = vector.extract_strided_slice %157 {offsets = [0, 16], sizes = [2, 16], strides = [1, 1]} : vector<2x48xf32> to vector<2x16xf32>
    %160 = vector.extract_strided_slice %157 {offsets = [0, 32], sizes = [2, 16], strides = [1, 1]} : vector<2x48xf32> to vector<2x16xf32>
    %161 = vector.extract_strided_slice %151 {offsets = [0, 48], sizes = [2, 16], strides = [1, 1]} : vector<2x64xf32> to vector<2x16xf32>
    %162 = math.tanh %161 : vector<2x16xf32>
    %163 = arith.mulf %159, %145 : vector<2x16xf32>
    %164 = arith.mulf %158, %162 : vector<2x16xf32>
    %165 = arith.addf %163, %164 : vector<2x16xf32>
    %166 = math.tanh %165 : vector<2x16xf32>
    %167 = arith.mulf %160, %166 : vector<2x16xf32>
    %c0_33 = arith.constant 0 : index
    %c112 = arith.constant 112 : index
    %168 = vector.load %arg4[%c0_33, %c112] : memref<2x128xf32, #tpu.memory_space<vmem>>, vector<2x16xf32>
    tpu.vector_store %arg4[%c0_33, %c112], %167 {strides = array<i32>} : memref<2x128xf32, #tpu.memory_space<vmem>>, vector<2x16xf32>,
    return
  }
}

</mosaic_0001>

<bundles_post_ra>
// kernel: tpu_custom_call.1
= control target key start
LH: loop header
LB: loop body
LE: loop exit
PB: predicated region body
PF: predicated region fallthrough
CT: control target
= control target key end

     0   :  { %9 = vsyncpa [#allocation3], 0  ;;  %s1589_s0 = inlined_call_operand.hbm [shape: f32[16,32], index: 0, kind: input, shape index: {}]   ;;  %s1590_s1 = inlined_call_operand.hbm [shape: f32[32,64], index: 1, kind: input, shape index: {}]   ;;  %s1591_s2 = inlined_call_operand.hbm [shape: f32[16,64], index: 2, kind: input, shape index: {}]   ;;  %s1592_s3 = inlined_call_operand.vmem [shape: f32[1,64], index: 3, kind: input, shape index: {}]   ;;  %s1593_s4 = inlined_call_operand.hbm [shape: f32[2,128], index: 4, kind: output, shape index: {}]  }
   0x1   :  { %10 = vsyncpa [#allocation6], 0 }
   0x2   :  { %11 = vsyncpa [#allocation4], 0  ;;  %s1372_s15 = smov [#allocation5]   ;;  %s1373_s17 = smov [#allocation2]  }
   0x3   :  { %s29_s16 = sshll.u32 %s1372_s15, 4  ;;  %s17_s18 = sshll.u32 %s1373_s17, 4  ;;  %s30_s16 = int_to_ptr.vmem [resolvable:$true] %s29_s16  ;;  %s1413_s18 = int_to_ptr.vmem [resolvable:$true] %s17_s18 }
   0x4   :  { %s1278_s21 = scalar_lea.hbm %s1590_s1, 512 }
   0x5   :  { %p1279_p0 = scmp.ne.s32.totalorder %s1590_s1, %s1278_s21  ;;  %p1282_p1 = scmp.lt.u32.totalorder %s1278_s21, %s1590_s1 }
   0x7   :  { %p1284_p2 = pnand %p1282_p1, %p1279_p0 }
   0x9   :  { %1287 = shalt.err (!%p1284_p2)
}
   0xa   :  { %s1288_s26 = scalar_lea.vmem %s30_s16, 512  ;;  %p1293_p4 = scmp.lt.s32.totalorder %s30_s16, %s30_s16 }
   0xb   :  { %p1289_p3 = scmp.ne.s32.totalorder %s30_s16, %s1288_s26  ;;  %p1294_p5 = scmp.lt.s32.totalorder %s1288_s26, %s1288_s26 }
   0xd   :  { %p1295_p6 = por %p1294_p5, %p1293_p4 }
   0xf   :  { %p1296_p7 = pnand %p1295_p6, %p1289_p3 }
  0x11   :  { %1299 = shalt.err (!%p1296_p7)
}
  0x12   :  { %s1374_s27 = smov 128   ;;  %s1375_s28 = smov 8  }
  0x13   :  { %35 = dma.hbm_to_vmem [thread:$0]  %s1590_s1, 512, %s30_s16, [#allocation6], %s1374_s27, %s1374_s27, %s1375_s28  }
  0x14   :  { %s1300_s7 = scalar_lea.hbm %s1589_s0, 256 }
  0x15   :  { %p1301_p8 = scmp.ne.s32.totalorder %s1589_s0, %s1300_s7  ;;  %p1304_p9 = scmp.lt.u32.totalorder %s1300_s7, %s1589_s0 }
  0x17   :  { %p1306_p10 = pnand %p1304_p9, %p1301_p8 }
  0x19   :  { %1309 = shalt.err (!%p1306_p10)
}
  0x1a   :  { %s1310_s12 = scalar_lea.vmem %s1413_s18, 256  ;;  %p1315_p12 = scmp.lt.s32.totalorder %s1413_s18, %s1413_s18 }
  0x1b   :  { %p1311_p11 = scmp.ne.s32.totalorder %s1413_s18, %s1310_s12  ;;  %p1316_p13 = scmp.lt.s32.totalorder %s1310_s12, %s1310_s12 }
  0x1d   :  { %p1317_p0 = por %p1316_p13, %p1315_p12 }
  0x1f   :  { %p1318_p1 = pnand %p1317_p0, %p1311_p11 }
  0x21   :  { %1321 = shalt.err (!%p1318_p1)
}
  0x22   :  { %23 = dma.hbm_to_vmem [thread:$0]  %s1589_s0, 256, %s1413_s18, [#allocation3], %s1374_s27, %s1374_s27, %s1375_s28  }
  0x23   :  { %s1376_s14 = smov [#allocation7]   ;;  %s1322_s19 = scalar_lea.hbm %s1591_s2, 256 }
  0x24   :  { %s41_s15 = sshll.u32 %s1376_s14, 4  ;;  %p1323_p2 = scmp.ne.s32.totalorder %s1591_s2, %s1322_s19  ;;  %s42_s15 = int_to_ptr.vmem [resolvable:$true] %s41_s15 }
  0x25   :  { %p1326_p3 = scmp.lt.u32.totalorder %s1322_s19, %s1591_s2 }
  0x27   :  { %p1328_p4 = pnand %p1326_p3, %p1323_p2 }
  0x29   :  { %1331 = shalt.err (!%p1328_p4)
}
  0x2a   :  { %s1332_s24 = scalar_lea.vmem %s42_s15, 256  ;;  %p1337_p6 = scmp.lt.s32.totalorder %s42_s15, %s42_s15 }
  0x2b   :  { %p1333_p5 = scmp.ne.s32.totalorder %s42_s15, %s1332_s24  ;;  %p1338_p7 = scmp.lt.s32.totalorder %s1332_s24, %s1332_s24 }
  0x2d   :  { %p1339_p8 = por %p1338_p7, %p1337_p6 }
  0x2f   :  { %p1340_p9 = pnand %p1339_p8, %p1333_p5 }
  0x31   :  { %1343 = shalt.err (!%p1340_p9)
}
  0x32   :  { %47 = dma.hbm_to_vmem [thread:$0]  %s1591_s2, 256, %s42_s15, [#allocation6], %s1374_s27, %s1374_s27, %s1375_s28  }
  0x33   :  { %1366 = dma.done.wait [#allocation3], 256  }
  0x34   :  { %1367 = vsyncadd [#allocation3], 4294967040 }
  0x35   :  { %1368 = dma.done.wait [#allocation6], 768  }
  0x36   :  { %1369 = vsyncadd [#allocation6], 4294966528  ;;  %v1377_v0 = vmov 0.0|0.0   ;;  %vm1378_vm0 = vmmov 0   ;;  %v1379_v1 = vmov 0.0   ;;  %vm72_vm1 = vcmask 261120  }
  0x37   :  { %1174 = vmatprep.subr.bf16.mxu1 %v1377_v0  ;;  %1114 = vmatprep.mubr.msk.f32.mxu1 %vm1378_vm0, %v1379_v1  ;;  %v61_v2 = vld [vmem:[#allocation5] sm:$0xff]  ;;  %v62_v3 = vld [vmem:[#allocation5 + $0x8] sm:$0xff]  ;;  %v63_v4 = vld [vmem:[#allocation5 + $0x10] sm:$0xff]  ;;  %s1380_s26 = smov 80   ;;  %s1382_s27 = smov 96   ;;  %vm259_vm2 = vcmask 123904  }
  0x38   :  { %v1166_v5 = vpack.c.bf16 %v62_v3, %v61_v2  ;;  %v64_v6 = vld [vmem:[#allocation5 + $0x18] sm:$0xff]  ;;  %v59_v7 = vld [vmem:[#allocation2] sm:$0xff]  ;;  %v154_v8 = vld [vmem:[#allocation7] sm:$0xff]  ;;  %vm156_vm3 = vcmask 130048   ;;  %s1383_s28 = smov 112   ;;  %s1384_s29 = smov 32  }
  0x39   :  { %v1170_v9 = vpack.c.bf16 %v64_v6, %v63_v4  ;;  %1107 = vmatprep.mubr.msk.f32.mxu0 %vm72_vm1, %v59_v7  ;;  %v155_v10 = vld [vmem:[#allocation7 + $0x8] sm:$0xff]  ;;  %v60_v12 = vld [vmem:[#allocation2 + $0x8] sm:$0xff]  ;;  %v1051_v14 = vld [vmem:[%s1592_s3] ss:$0 sm:$0xff]  ;;  %s1381_s3 = smov 16   ;;  %s1385_s30 = smov 64  }
  0x3a   :  { %1167 = vmatprep.subr.bf16.mxu0 %v1166_v5  ;;  %v1469_v11 = vpack.c.bf16 %v155_v10, %v154_v8  ;;  %vm368_vm4 = vcmask 257154   ;;  %vm476_vm5 = vcmask 390404   ;;  %s1386_s5 = smov 48   ;;  %vm589_vm6 = vcmask 523654   ;;  %s1387_s6 = smov [#allocation8]  }
  0x3b   :  { %1169 = vmatpush3.bf16.msra.mxu0 %v1166_v5  ;;  %vm698_vm7 = vcmask 648704   ;;  %vm809_vm8 = vcmask 781954   ;;  %vm921_vm9 = vcmask 915204   ;;  %s1041_s7 = sshll.u32 %s1387_s6, 4  ;;  %vm1033_vm10 = vcmask 1048454   ;;  %s1042_s7 = int_to_ptr.vmem [resolvable:$true] %s1041_s7 }
  0x3c   :  { %1171 = vmatprep.subr.bf16.mxu0 %v1170_v9  ;;  %1176 = vmatpush3.bf16.msra.mxu1 %v1469_v11  ;;  %s1344_s8 = scalar_lea.vmem %s1042_s7, 32  ;;  %p1349_p11 = scmp.lt.s32.totalorder %s1042_s7, %s1042_s7 }
  0x3d   :  { %1177 = vmatprep.subr.bf16.mxu1 %v1377_v0  ;;  %p1345_p10 = scmp.ne.s32.totalorder %s1042_s7, %s1344_s8  ;;  %p1350_p12 = scmp.lt.s32.totalorder %s1344_s8, %s1344_s8 }
  0x3f   :  { %1173 = vmatpush3.bf16.msra.mxu0 %v1170_v9  ;;  %1115 = vmatmul.mubr.f32.vlgmr.msra.gmra.mrb[0].mxu1 %v1379_v1  ;;  %p1351_p13 = por %p1350_p12, %p1349_p11 }
  0x40   :  { %1179 = vmatpush3.bf16.msra.mxu1 %v1469_v11  ;;  %1121 = vmatprep.mubr.msk.f32.mxu1 %vm1378_vm0, %v1379_v1 }
  0x41   :  { %1180 = vmatprep.subr.bf16.mxu0 %v1377_v0  ;;  %1183 = vmatprep.subr.bf16.mxu1 %v1377_v0  ;;  %p1352_p0 = pnand %p1351_p13, %p1345_p10 }
  0x42   :  { %1108 = vmatmul.mubr.msk.f32.vlgmr.msra.gmra.mrb[0].mxu0 %vm72_vm1, %v60_v12 }
  0x43   :  { %1182 = vmatpush3.bf16.msra.mxu0 %v1469_v11  ;;  %1128 = vmatprep.mubr.msk.f32.mxu0 %vm1378_vm0, %v1379_v1 }
  0x44   :  { %1186 = vmatprep.subr.bf16.mxu0 %v1377_v0 }
 0x112   :  { %v226_v13 = vpop.f32.mrb[0].mxu1 }
 0x113   :  { %v1116_v15 = vpop.f32.mrb[1].mxu1 }
 0x115   :  { %v1109_v16 = vpop.f32.mrb[0].mxu0 }
 0x116   :  { %v1487_v17 = vadd.f32 %v1109_v16, %v1051_v14  ;;  %v145_v18 = vpop.f32.mrb[1].mxu0 }
 0x117   :  { %v1489_v19 = vadd.f32 %v1051_v14, %v145_v18 }
 0x119   :  { %v230_v20 = vadd.f32 %v226_v13, %v1489_v19 }
 0x11b   :  { %1214 = vtanh.f32 %v230_v20  ;;  %v1054_v22 = vmul.f32 -1.442695, %v230_v20 }
 0x11d   :  { %1216 = vpow2.f32 %v1054_v22 }
 0x125   :  { %v1215_v21 = vpop.eup %1214 }
 0x126   :  { %240 = vrot.lane.b32.xlu0 %v1215_v21, %s1380_s26 }
 0x127   :  { %v1217_v23 = vpop.eup %1216 }
 0x128   :  { %v234_v24 = vadd.f32 1.0, %v1217_v23 }
 0x12a   :  { %1218 = vrcp.f32 %v234_v24 }
 0x134   :  { %v1219_v25 = vpop.eup %1218 }
 0x135   :  { %v238_v28 = vmul.f32 0.0, %v1219_v25 }
 0x198   :  { %v241_v26 = vpop.permute.xlu0 %240 }
 0x199   :  { %v243_v27 = vmul.f32 %v1219_v25, %v241_v26 }
 0x19b   :  { %245 = vrot.lane.b32.xlu0 %v243_v27, %s1381_s3 }
 0x20d   :  { %v246_v29 = vpop.permute.xlu0 %245 }
 0x20e   :  { %v248_v30 = vadd.f32 %v246_v29, %v238_v28 }
 0x210   :  { %1220 = vtanh.f32 %v248_v30  ;;  %v345_v46 = vrot.slane %v248_v30, 6 }
 0x21a   :  { %v1221_v31 = vpop.eup %1220 }
 0x21b   :  { %251 = vrot.lane.b32.xlu1 %v1221_v31, %s1381_s3 }
 0x28d   :  { %v252_v32 = vpop.permute.xlu1 %251 }
 0x28e   :  { %v254_v33 = vmul.f32 %v1219_v25, %v252_v32 }
 0x290   :  { %256 = vrot.lane.b32.xlu1 %v254_v33, %s1382_s27 }
 0x302   :  { %v257_v34 = vpop.permute.xlu1 %256 }
 0x303   :  { %260 = vst.msk [vmem:[#allocation8] sm:$0x3] %vm259_vm2, %v257_v34  ;;  %1122 = vmatmul.mubr.msk.f32.vlgmr.msra.gmra.mrb[2].mxu1 %vm156_vm3, %v257_v34 }
 0x304   :  { %1185 = vmatpush3.bf16.msra.mxu1 %v1469_v11  ;;  %1135 = vmatprep.mubr.msk.f32.mxu1 %vm1378_vm0, %v1379_v1 }
 0x305   :  { %1189 = vmatprep.subr.bf16.mxu1 %v1377_v0 }
 0x3d6   :  { %v329_v35 = vpop.f32.mrb[2].mxu1 }
 0x3d7   :  { %v334_v36 = vrot.slane %v329_v35, 6  ;;  %v1123_v37 = vpop.f32.mrb[3].mxu1 }
 0x3d9   :  { %v336_v38 = vadd.f32 %v334_v36, %v1489_v19 }
 0x3db   :  { %1222 = vtanh.f32 %v336_v38  ;;  %v1056_v40 = vmul.f32 -1.442695, %v336_v38 }
 0x3dd   :  { %1224 = vpow2.f32 %v1056_v40 }
 0x3e5   :  { %v1223_v39 = vpop.eup %1222 }
 0x3e6   :  { %349 = vrot.lane.b32.xlu0 %v1223_v39, %s1380_s26 }
 0x3e7   :  { %v1225_v41 = vpop.eup %1224 }
 0x3e8   :  { %v340_v42 = vadd.f32 1.0, %v1225_v41 }
 0x3ea   :  { %1226 = vrcp.f32 %v340_v42 }
 0x3f4   :  { %v1227_v43 = vpop.eup %1226 }
 0x3f5   :  { %v347_v47 = vmul.f32 %v1227_v43, %v345_v46 }
 0x458   :  { %v350_v44 = vpop.permute.xlu0 %349 }
 0x459   :  { %v352_v45 = vmul.f32 %v1227_v43, %v350_v44 }
 0x45b   :  { %354 = vrot.lane.b32.xlu1 %v352_v45, %s1381_s3 }
 0x4cd   :  { %v355_v48 = vpop.permute.xlu1 %354 }
 0x4ce   :  { %v357_v49 = vadd.f32 %v355_v48, %v347_v47 }
 0x4d0   :  { %1228 = vtanh.f32 %v357_v49  ;;  %v457_v4 = vrot.slane %v357_v49, 6 }
 0x4da   :  { %v1229_v50 = vpop.eup %1228 }
 0x4db   :  { %360 = vrot.lane.b32.xlu0 %v1229_v50, %s1381_s3 }
 0x54d   :  { %v361_v51 = vpop.permute.xlu0 %360 }
 0x54e   :  { %v1505_v52 = vmul.f32 %v1227_v43, %v361_v51 }
 0x550   :  { %v370_v53 = vrot.slane %v1505_v52, 2 }
 0x552   :  { %371 = vrot.lane.b32.xlu1 %v370_v53, %s1382_s27 }
 0x5c4   :  { %v372_v54 = vpop.permute.xlu1 %371 }
 0x5c5   :  { %1129 = vmatmul.mubr.msk.f32.vlgmr.msra.gmra.mrb[2].mxu0 %vm156_vm3, %v372_v54 }
 0x5c6   :  { %1188 = vmatpush3.bf16.msra.mxu0 %v1469_v11  ;;  %1142 = vmatprep.mubr.msk.f32.mxu0 %vm1378_vm0, %v1379_v1 }
 0x5c7   :  { %1192 = vmatprep.subr.bf16.mxu0 %v1377_v0 }
 0x698   :  { %v441_v55 = vpop.f32.mrb[2].mxu0 }
 0x699   :  { %v446_v56 = vrot.slane %v441_v55, 4  ;;  %v1130_v57 = vpop.f32.mrb[3].mxu0 }
 0x69b   :  { %v448_v58 = vadd.f32 %v446_v56, %v1489_v19 }
 0x69d   :  { %1230 = vtanh.f32 %v448_v58  ;;  %v1058_v60 = vmul.f32 -1.442695, %v448_v58 }
 0x69f   :  { %1232 = vpow2.f32 %v1058_v60 }
 0x6a7   :  { %v1231_v59 = vpop.eup %1230 }
 0x6a8   :  { %461 = vrot.lane.b32.xlu0 %v1231_v59, %s1380_s26 }
 0x6a9   :  { %v1233_v61 = vpop.eup %1232 }
 0x6aa   :  { %v452_v62 = vadd.f32 1.0, %v1233_v61 }
 0x6ac   :  { %1234 = vrcp.f32 %v452_v62 }
 0x6b6   :  { %v1235_v63 = vpop.eup %1234 }
 0x6b7   :  { %v459_v5 = vmul.f32 %v1235_v63, %v457_v4 }
 0x71a   :  { %v462_v2 = vpop.permute.xlu0 %461 }
 0x71b   :  { %v464_v3 = vmul.f32 %v1235_v63, %v462_v2 }
 0x71d   :  { %466 = vrot.lane.b32.xlu1 %v464_v3, %s1381_s3 }
 0x78f   :  { %v467_v6 = vpop.permute.xlu1 %466 }
 0x790   :  { %v469_v7 = vadd.f32 %v467_v6, %v459_v5 }
 0x792   :  { %1236 = vtanh.f32 %v469_v7 }
 0x79c   :  { %v1237_v8 = vpop.eup %1236 }
 0x79d   :  { %472 = vrot.lane.b32.xlu0 %v1237_v8, %s1381_s3 }
 0x80f   :  { %v473_v9 = vpop.permute.xlu0 %472 }
 0x810   :  { %v1518_v10 = vmul.f32 %v1235_v63, %v473_v9 }
 0x812   :  { %v479_v12 = vrot.slane %v1518_v10, 4 }
 0x814   :  { %480 = vrot.lane.b32.xlu1 %v479_v12, %s1382_s27 }
 0x886   :  { %v481_v13 = vpop.permute.xlu1 %480 }
 0x887   :  { %1136 = vmatmul.mubr.msk.f32.vlgmr.msra.gmra.mrb[4].mxu1 %vm156_vm3, %v481_v13 }
 0x888   :  { %1191 = vmatpush3.bf16.msra.mxu1 %v1469_v11  ;;  %1149 = vmatprep.mubr.msk.f32.mxu1 %vm1378_vm0, %v1379_v1 }
 0x889   :  { %1195 = vmatprep.subr.bf16.mxu1 %v1377_v0  ;;  %v566_v0 = vrot.slane %v469_v7, 6 }
 0x95a   :  { %v550_v14 = vpop.f32.mrb[4].mxu1 }
 0x95b   :  { %v555_v15 = vrot.slane %v550_v14, 2  ;;  %v1137_v16 = vpop.f32.mrb[5].mxu1 }
 0x95d   :  { %v557_v18 = vadd.f32 %v555_v15, %v1489_v19 }
 0x95f   :  { %1238 = vtanh.f32 %v557_v18  ;;  %v1060_v21 = vmul.f32 -1.442695, %v557_v18 }
 0x961   :  { %1240 = vpow2.f32 %v1060_v21 }
 0x969   :  { %v1239_v20 = vpop.eup %1238 }
 0x96a   :  { %570 = vrot.lane.b32.xlu0 %v1239_v20, %s1380_s26 }
 0x96b   :  { %v1241_v22 = vpop.eup %1240 }
 0x96c   :  { %v561_v23 = vadd.f32 1.0, %v1241_v22 }
 0x96e   :  { %1242 = vrcp.f32 %v561_v23 }
 0x978   :  { %v1243_v24 = vpop.eup %1242 }
 0x979   :  { %v568_v27 = vmul.f32 %v1243_v24, %v566_v0 }
 0x9dc   :  { %v571_v25 = vpop.permute.xlu0 %570 }
 0x9dd   :  { %v573_v26 = vmul.f32 %v1243_v24, %v571_v25 }
 0x9df   :  { %575 = vrot.lane.b32.xlu1 %v573_v26, %s1381_s3 }
 0xa51   :  { %v576_v28 = vpop.permute.xlu1 %575 }
 0xa52   :  { %v578_v29 = vadd.f32 %v576_v28, %v568_v27 }
 0xa54   :  { %1244 = vtanh.f32 %v578_v29  ;;  %v675_v44 = vrot.slane %v578_v29, 6 }
 0xa5e   :  { %v1245_v19 = vpop.eup %1244 }
 0xa5f   :  { %581 = vrot.lane.b32.xlu0 %v1245_v19, %s1381_s3 }
 0xad1   :  { %v582_v30 = vpop.permute.xlu0 %581 }
 0xad2   :  { %v1531_v31 = vmul.f32 %v1243_v24, %v582_v30 }
 0xad4   :  { %v591_v32 = vrot.slane %v1531_v31, 6 }
 0xad6   :  { %592 = vrot.lane.b32.xlu1 %v591_v32, %s1382_s27 }
 0xb48   :  { %v593_v33 = vpop.permute.xlu1 %592 }
 0xb49   :  { %1143 = vmatmul.mubr.msk.f32.vlgmr.msra.gmra.mrb[4].mxu0 %vm156_vm3, %v593_v33 }
 0xb4a   :  { %1194 = vmatpush3.bf16.msra.mxu0 %v1469_v11  ;;  %1156 = vmatprep.mubr.msk.f32.mxu0 %vm1378_vm0, %v1379_v1 }
 0xc1c   :  { %v662_v34 = vpop.f32.mrb[4].mxu0 }
 0xc1d   :  { %v666_v35 = vadd.f32 %v662_v34, %v1487_v17  ;;  %v1144_v36 = vpop.f32.mrb[5].mxu0 }
 0xc1f   :  { %1246 = vtanh.f32 %v666_v35  ;;  %v1062_v38 = vmul.f32 -1.442695, %v666_v35 }
 0xc21   :  { %1248 = vpow2.f32 %v1062_v38 }
 0xc29   :  { %v1247_v37 = vpop.eup %1246 }
 0xc2a   :  { %679 = vrot.lane.b32.xlu0 %v1247_v37, %s1380_s26 }
 0xc2b   :  { %v1249_v39 = vpop.eup %1248 }
 0xc2c   :  { %v670_v40 = vadd.f32 1.0, %v1249_v39 }
 0xc2e   :  { %1250 = vrcp.f32 %v670_v40 }
 0xc38   :  { %v1251_v41 = vpop.eup %1250 }
 0xc39   :  { %v677_v45 = vmul.f32 %v1251_v41, %v675_v44 }
 0xc9c   :  { %v680_v42 = vpop.permute.xlu0 %679 }
 0xc9d   :  { %v682_v43 = vmul.f32 %v1251_v41, %v680_v42 }
 0xc9f   :  { %684 = vrot.lane.b32.xlu1 %v682_v43, %s1381_s3 }
 0xd11   :  { %v685_v46 = vpop.permute.xlu1 %684 }
 0xd12   :  { %v687_v47 = vadd.f32 %v685_v46, %v677_v45 }
 0xd14   :  { %1252 = vtanh.f32 %v687_v47 }
 0xd1e   :  { %v1253_v48 = vpop.eup %1252 }
 0xd1f   :  { %690 = vrot.lane.b32.xlu0 %v1253_v48, %s1381_s3 }
 0xd91   :  { %v691_v49 = vpop.permute.xlu0 %690 }
 0xd92   :  { %v1543_v50 = vmul.f32 %v1251_v41, %v691_v49 }
 0xd94   :  { %700 = vrot.lane.b32.xlu1 %v1543_v50, %s1382_s27 }
 0xe06   :  { %v701_v51 = vpop.permute.xlu1 %700 }
 0xe07   :  { %1150 = vmatmul.mubr.msk.f32.vlgmr.msra.gmra.mrb[6].mxu1 %vm156_vm3, %v701_v51 }
 0xe08   :  { %1197 = vmatpush3.bf16.msra.mxu1 %v1469_v11  ;;  %1163 = vmatprep.mubr.msk.f32.mxu1 %vm1378_vm0, %v1379_v1  ;;  %v786_v1 = vrot.slane %v687_v47, 6 }
 0xeda   :  { %v770_v53 = vpop.f32.mrb[6].mxu1 }
 0xedb   :  { %v775_v54 = vrot.slane %v770_v53, 6  ;;  %v1151_v55 = vpop.f32.mrb[7].mxu1 }
 0xedd   :  { %v777_v56 = vadd.f32 %v775_v54, %v1487_v17 }
 0xedf   :  { %1254 = vtanh.f32 %v777_v56  ;;  %v1064_v58 = vmul.f32 -1.442695, %v777_v56 }
 0xee1   :  { %1256 = vpow2.f32 %v1064_v58 }
 0xee9   :  { %v1255_v57 = vpop.eup %1254 }
 0xeea   :  { %790 = vrot.lane.b32.xlu0 %v1255_v57, %s1380_s26 }
 0xeeb   :  { %v1257_v59 = vpop.eup %1256 }
 0xeec   :  { %v781_v60 = vadd.f32 1.0, %v1257_v59 }
 0xeee   :  { %1258 = vrcp.f32 %v781_v60 }
 0xef8   :  { %v1259_v61 = vpop.eup %1258 }
 0xef9   :  { %v788_v63 = vmul.f32 %v1259_v61, %v786_v1 }
 0xf5c   :  { %v791_v62 = vpop.permute.xlu0 %790 }
 0xf5d   :  { %v793_v11 = vmul.f32 %v1259_v61, %v791_v62 }
 0xf5f   :  { %795 = vrot.lane.b32.xlu1 %v793_v11, %s1381_s3 }
 0xfd1   :  { %v796_v2 = vpop.permute.xlu1 %795 }
 0xfd2   :  { %v798_v3 = vadd.f32 %v796_v2, %v788_v63 }
 0xfd4   :  { %1260 = vtanh.f32 %v798_v3  ;;  %v898_v24 = vrot.slane %v798_v3, 6 }
 0xfde   :  { %v1261_v4 = vpop.eup %1260 }
 0xfdf   :  { %801 = vrot.lane.b32.xlu0 %v1261_v4, %s1381_s3 }
0x1051   :  { %v802_v5 = vpop.permute.xlu0 %801 }
0x1052   :  { %v1555_v6 = vmul.f32 %v1259_v61, %v802_v5 }
0x1054   :  { %v811_v7 = vrot.slane %v1555_v6, 2 }
0x1056   :  { %812 = vrot.lane.b32.xlu1 %v811_v7, %s1382_s27 }
0x10c8   :  { %v813_v8 = vpop.permute.xlu1 %812 }
0x10c9   :  { %1157 = vmatmul.mubr.msk.f32.vlgmr.msra.gmra.mrb[6].mxu0 %vm156_vm3, %v813_v8 }
0x119c   :  { %v882_v9 = vpop.f32.mrb[6].mxu0 }
0x119d   :  { %v887_v12 = vrot.slane %v882_v9, 4  ;;  %v1158_v13 = vpop.f32.mrb[7].mxu0 }
0x119f   :  { %v889_v14 = vadd.f32 %v887_v12, %v1487_v17 }
0x11a1   :  { %1262 = vtanh.f32 %v889_v14  ;;  %v1066_v16 = vmul.f32 -1.442695, %v889_v14 }
0x11a3   :  { %1264 = vpow2.f32 %v1066_v16 }
0x11ab   :  { %v1263_v15 = vpop.eup %1262 }
0x11ac   :  { %902 = vrot.lane.b32.xlu0 %v1263_v15, %s1380_s26 }
0x11ad   :  { %v1265_v18 = vpop.eup %1264 }
0x11ae   :  { %v893_v20 = vadd.f32 1.0, %v1265_v18 }
0x11b0   :  { %1266 = vrcp.f32 %v893_v20 }
0x11ba   :  { %v1267_v21 = vpop.eup %1266 }
0x11bb   :  { %v900_v25 = vmul.f32 %v1267_v21, %v898_v24 }
0x121e   :  { %v903_v22 = vpop.permute.xlu0 %902 }
0x121f   :  { %v905_v23 = vmul.f32 %v1267_v21, %v903_v22 }
0x1221   :  { %907 = vrot.lane.b32.xlu1 %v905_v23, %s1381_s3 }
0x1293   :  { %v908_v26 = vpop.permute.xlu1 %907 }
0x1294   :  { %v910_v0 = vadd.f32 %v908_v26, %v900_v25 }
0x1296   :  { %1268 = vtanh.f32 %v910_v0 }
0x12a0   :  { %v1269_v27 = vpop.eup %1268 }
0x12a1   :  { %913 = vrot.lane.b32.xlu0 %v1269_v27, %s1381_s3 }
0x1313   :  { %v914_v28 = vpop.permute.xlu0 %913 }
0x1314   :  { %v916_v29 = vmul.f32 %v1267_v21, %v914_v28 }
0x1316   :  { %v923_v19 = vrot.slane %v916_v29, 4 }
0x1318   :  { %924 = vrot.lane.b32.xlu1 %v923_v19, %s1382_s27 }
0x138a   :  { %v925_v30 = vpop.permute.xlu1 %924 }
0x138b   :  { %1164 = vmatmul.mubr.msk.f32.vlgmr.msra.gmra.mrb[8].mxu1 %vm156_vm3, %v925_v30 }
0x145e   :  { %v994_v32 = vpop.f32.mrb[8].mxu1 }
0x145f   :  { %v999_v33 = vrot.slane %v994_v32, 2  ;;  %v1165_v34 = vpop.f32.mrb[9].mxu1 }
0x1461   :  { %v1001_v35 = vadd.f32 %v999_v33, %v1487_v17  ;;  %v1010_v17 = vrot.slane %v910_v0, 6 }
0x1463   :  { %1270 = vtanh.f32 %v1001_v35  ;;  %v1068_v37 = vmul.f32 -1.442695, %v1001_v35 }
0x1465   :  { %1272 = vpow2.f32 %v1068_v37 }
0x146d   :  { %v1271_v36 = vpop.eup %1270 }
0x146e   :  { %1014 = vrot.lane.b32.xlu0 %v1271_v36, %s1380_s26 }
0x146f   :  { %v1273_v38 = vpop.eup %1272 }
0x1470   :  { %v1005_v39 = vadd.f32 1.0, %v1273_v38 }
0x1472   :  { %1274 = vrcp.f32 %v1005_v39 }
0x147c   :  { %v1275_v40 = vpop.eup %1274 }
0x147d   :  { %v1012_v43 = vmul.f32 %v1275_v40, %v1010_v17 }
0x14e0   :  { %v1015_v41 = vpop.permute.xlu0 %1014 }
0x14e1   :  { %v1017_v42 = vmul.f32 %v1275_v40, %v1015_v41 }
0x14e3   :  { %1019 = vrot.lane.b32.xlu1 %v1017_v42, %s1381_s3 }
0x14e7   :  { %365 = vrot.lane.b32.xlu1 %v1505_v52, %s1383_s28 }
0x14eb   :  { %695 = vrot.lane.b32.xlu1 %v1543_v50, %s1384_s29 }
0x14ef   :  { %918 = vrot.lane.b32.xlu1 %v916_v29, %s1385_s30 }
0x1555   :  { %v1020_v44 = vpop.permute.xlu1 %1019 }
0x1556   :  { %v1022_v45 = vadd.f32 %v1020_v44, %v1012_v43 }
0x1558   :  { %1276 = vtanh.f32 %v1022_v45 }
0x1559   :  { %v366_v46 = vpop.permute.xlu1 %365 }
0x155a   :  { %369 = vst.msk [vmem:[#allocation8 - $0x2] sm:$0xc] %vm368_vm4, %v366_v46 }
0x155b   :  { %477 = vst.msk [vmem:[#allocation8 - $0x4] sm:$0x30] %vm476_vm5, %v1518_v10 }
0x155d   :  { %v696_v49 = vpop.permute.xlu1 %695 }
0x1561   :  { %v919_v51 = vpop.permute.xlu1 %918 }
0x1562   :  { %v1277_v47 = vpop.eup %1276 }
0x1563   :  { %1025 = vrot.lane.b32.xlu0 %v1277_v47, %s1381_s3 }
0x1567   :  { %586 = vrot.lane.b32.xlu0 %v1531_v31, %s1381_s3 }
0x156b   :  { %806 = vrot.lane.b32.xlu0 %v1555_v6, %s1386_s5 }
0x15d5   :  { %v1026_v52 = vpop.permute.xlu0 %1025 }
0x15d6   :  { %v1028_v48 = vmul.f32 %v1275_v40, %v1026_v52 }
0x15d8   :  { %1030 = vrot.lane.b32.xlu0 %v1028_v48, %s1380_s26 }
0x15d9   :  { %v587_v50 = vpop.permute.xlu0 %586 }
0x15da   :  { %590 = vst.msk [vmem:[#allocation8 - $0x6] sm:$0xc0] %vm589_vm6, %v587_v50 }
0x15db   :  { %699 = vst.msk [vmem:[#allocation8] sm:$0x3] %vm698_vm7, %v696_v49 }
0x15dd   :  { %v807_v10 = vpop.permute.xlu0 %806 }
0x15de   :  { %810 = vst.msk [vmem:[#allocation8 - $0x2] sm:$0xc] %vm809_vm8, %v807_v10 }
0x15df   :  { %922 = vst.msk [vmem:[#allocation8 - $0x4] sm:$0x30] %vm921_vm9, %v919_v51 }
0x164a   :  { %v1031_v31 = vpop.permute.xlu0 %1030 }
0x164b   :  { %1034 = vst.msk [vmem:[#allocation8 - $0x6] sm:$0xc0] %vm1033_vm10, %v1031_v31 }
0x164c   :  { %1355 = shalt.err (!%p1352_p0)
}
0x164d   :  { %s1356_s11 = scalar_lea.hbm %s1593_s4, 32 }
0x164e   :  { %p1357_p1 = scmp.ne.s32.totalorder %s1593_s4, %s1356_s11  ;;  %p1360_p2 = scmp.lt.u32.totalorder %s1356_s11, %s1593_s4 }
0x1650   :  { %p1362_p3 = pnand %p1360_p2, %p1357_p1 }
0x1652   :  { %1365 = shalt.err (!%p1362_p3)
}
0x1653   :  { %1044 = dma.vmem_to_hbm [thread:$0]  %s1042_s7, 32, %s1593_s4, [#allocation4]  }
0x1654   :  { %1370 = dma.done.wait [#allocation4], 32  }
0x1655   :  { %1371 = vsyncadd [#allocation4], 4294967264 }
0x1656   :  { %1048 = vsyncpa [#allocation3], 1 }
0x1657   :  { %1049 = vsyncpa [#allocation6], 1 }
0x1658   :  { %1050 = vsyncpa [#allocation4], 1 }

</bundles_post_ra>
